<compile_context>
chip_gen: v7x
topology: tpu7x:2x2x1
jax: 0.10.0
libtpu: 0.0.40
codegen_flags: <defaults>
</compile_context>

<pallas_src>
import jax
import jax.numpy as jnp
from jax.experimental import pallas as pl
from jax.experimental.pallas import tpu as pltpu


# ----------------------------------------------------------------------------
# Fused kernel
# ----------------------------------------------------------------------------

def _make_fused_kernel(num_echo, hidden_dim):
    """Fused forward kernel: first block + `num_echo` echo blocks + head.

    vecs layout (f32, shape (3 + 2L, 2H)):
      row 0            : [bx0 (H) | 0]
      row 1            : [wf  (H) | 0]
      rows 2 .. 2+L-1  : fused echo bias  [bx_i | br_i]           (2H)
      rows 2+L .. 2+2L-1: gate row        [wg_h_i | wg_echo_i]    (2H)
      row 2+2L         : scalars  [bg_0 .. bg_{L-1}, bf, 0 ...]
    """
    H = hidden_dim
    L = num_echo
    scal_row = 2 + 2 * L

    def kernel(*refs):
        if L > 0:
            x_ref, wx0_ref, wxr_ref, vec_ref, o_ref = refs
        else:
            x_ref, wx0_ref, vec_ref, o_ref = refs

        # Block 0: h = tanh(x @ W0 + b0)   (bf16 MXU, f32 accumulate)
        h = jnp.tanh(
            jnp.dot(x_ref[...].astype(jnp.bfloat16), wx0_ref[...],
                    preferred_element_type=jnp.float32)
            + vec_ref[0:1, :H])

        # Echo blocks: one fused (H, 2H) matmul per layer.
        for i in range(L):
            pre = (jnp.dot(h.astype(jnp.bfloat16), wxr_ref[i],
                           preferred_element_type=jnp.float32)
                   + vec_ref[2 + i:3 + i, :])
            h2 = jnp.tanh(pre)                      # (B, 2H) = [hi | echo]
            hi = h2[:, :H]
            echo = h2[:, H:]
            # gate = sigmoid(sum(h2 * [wg_h | wg_echo]) + bg)
            g = (jnp.sum(h2 * vec_ref[2 + L + i:3 + L + i, :],
                         axis=-1, keepdims=True)
                 + vec_ref[scal_row:scal_row + 1, i:i + 1])
            gate = jax.nn.sigmoid(g)                # (B, 1)
            h = echo + gate * (hi - echo)           # == hi*g + echo*(1-g)

        # Final head (N=1 -> VPU multiply + XLU lane reduce).
        out = (jnp.sum(h * vec_ref[1:2, :H], axis=-1, keepdims=True)
               + vec_ref[scal_row:scal_row + 1, L:L + 1])
        out = jax.nn.sigmoid(out)                   # (B, 1)
        # Lane-dense store into a (TILE_B, 128) slab; wrapper slices col 0.
        o_ref[...] = jnp.broadcast_to(out, o_ref.shape)

    return kernel


# ----------------------------------------------------------------------------
# Parameters (weights stored as (in, out), i.e. transposed vs nn.Linear)
# ----------------------------------------------------------------------------

def _bf16_round(w):
    # MXU weights live in bf16; round-trip so the f32 reference sees the same
    # weight values as the kernel.
    return w.astype(jnp.bfloat16).astype(jnp.float32)


def init_params(key, input_dim, hidden_dim, depth):
    blocks = []
    for i in range(depth):
        d_in = input_dim if i == 0 else hidden_dim
        key, k1, k2, k3, k4, k5, k6 = jax.random.split(key, 7)
        blocks.append({
            "wx": _bf16_round(
                jax.random.normal(k1, (d_in, hidden_dim), jnp.float32) * 0.1),
            "bx": jax.random.normal(k2, (hidden_dim,), jnp.float32) * 0.1,
            "wr": _bf16_round(
                jax.random.normal(k3, (hidden_dim, hidden_dim), jnp.float32) * 0.1),
            "br": jax.random.normal(k4, (hidden_dim,), jnp.float32) * 0.1,
            # gate Linear(2H, 1) weight as a (2H,) row: [h-half | echo-half]
            "wg": jax.random.normal(k5, (2 * hidden_dim,), jnp.float32) * 0.1,
            "bg": jax.random.normal(k6, (), jnp.float32) * 0.1,
        })
    key, k1, k2 = jax.random.split(key, 3)
    final = {
        "wf": jax.random.normal(k1, (hidden_dim,), jnp.float32) * 0.1,
        "bf": jax.random.normal(k2, (), jnp.float32) * 0.1,
    }
    return blocks, final


def pack_params(block_params, final_params, hidden_dim):
    """Fuse per-layer weights/biases into the kernel's 4-input layout."""
    H = hidden_dim
    L = len(block_params) - 1
    assert L + 1 <= 2 * H, "scalar row needs L+1 <= 2H columns"

    wx0 = block_params[0]["wx"].astype(jnp.bfloat16)          # (d_in, H) bf16

    vecs = jnp.zeros((3 + 2 * L, 2 * H), jnp.float32)
    vecs = vecs.at[0, :H].set(block_params[0]["bx"])
    vecs = vecs.at[1, :H].set(final_params["wf"])
    scal_row = 2 + 2 * L
    vecs = vecs.at[scal_row, L].set(final_params["bf"])

    if L > 0:
        wxr = jnp.stack([jnp.concatenate([p["wx"], p["wr"]], axis=1)
                         for p in block_params[1:]]).astype(jnp.bfloat16)
        for i, p in enumerate(block_params[1:]):
            vecs = vecs.at[2 + i, :H].set(p["bx"])
            vecs = vecs.at[2 + i, H:].set(p["br"])
            vecs = vecs.at[2 + L + i, :].set(p["wg"])
            vecs = vecs.at[scal_row, i].set(p["bg"])
    else:
        wxr = None

    return {"wx0": wx0, "wxr": wxr, "vecs": vecs, "H": H, "L": L}


# ----------------------------------------------------------------------------
# Fused forward (one pallas_call, parallel grid over batch tiles)
# ----------------------------------------------------------------------------

def rflnet_forward(x, packed, tile_b=8):
    B, d_in = x.shape
    H, L = packed["H"], packed["L"]

    n_tiles = pl.cdiv(B, tile_b)
    Bp = n_tiles * tile_b
    if Bp != B:
        x = jnp.pad(x, ((0, Bp - B), (0, 0)))

    def full_spec(a):
        rank = a.ndim
        return pl.BlockSpec(a.shape, lambda b: (0,) * rank)

    args = [x, packed["wx0"]]
    in_specs = [pl.BlockSpec((tile_b, d_in), lambda b: (b, 0)),
                full_spec(packed["wx0"])]
    if L > 0:
        args.append(packed["wxr"])
        in_specs.append(full_spec(packed["wxr"]))
    args.append(packed["vecs"])
    in_specs.append(full_spec(packed["vecs"]))

    # Advisory cost estimate for the XLA scheduler.
    flops = (2 * Bp * d_in * H
             + L * (2 * Bp * H * (2 * H) + 4 * Bp * (2 * H))
             + 2 * Bp * H)
    transcendentals = Bp * H + L * Bp * (2 * H + 1) + Bp
    bytes_accessed = (sum(int(a.size) * a.dtype.itemsize for a in args)
                      + Bp * 128 * 4)

    out_padded = pl.pallas_call(
        _make_fused_kernel(L, H),
        grid=(n_tiles,),
        in_specs=in_specs,
        out_specs=pl.BlockSpec((tile_b, 128), lambda b: (b, 0)),
        out_shape=jax.ShapeDtypeStruct((Bp, 128), jnp.float32),
        compiler_params=pltpu.CompilerParams(
            dimension_semantics=("parallel",)),
        cost_estimate=pl.CostEstimate(
            flops=int(flops),
            transcendentals=int(transcendentals),
            bytes_accessed=int(bytes_accessed)),
    )(*args)

    return out_padded[:B, :1]


# ----------------------------------------------------------------------------
# Pure-JAX reference (mirrors RFLNet.forward, return_resonance=False)
# ----------------------------------------------------------------------------

def rflnet_reference(x, block_params, final_params):
    h = x
    resonance = None
    for p in block_params:
        hh = jnp.tanh(h @ p["wx"] + p["bx"])
        if resonance is not None:
            echo = jnp.tanh(resonance @ p["wr"] + p["br"])
            concat = jnp.concatenate([hh, echo], axis=-1)
            gate = jax.nn.sigmoid(concat @ p["wg"][:, None] + p["bg"])
            hh = hh * gate + echo * (1.0 - gate)
        h = hh
        resonance = hh
    return jax.nn.sigmoid(h @ final_params["wf"][:, None] + final_params["bf"])


if __name__ == "__main__":
    batch, input_dim, hidden_dim, depth = 16, 16, 32, 3

    key = jax.random.PRNGKey(0)
    key, kx = jax.random.split(key)
    x = jax.random.normal(kx, (batch, input_dim), jnp.float32)

    block_params, final_params = init_params(key, input_dim, hidden_dim, depth)
    packed = pack_params(block_params, final_params, hidden_dim)

    out = rflnet_forward(x, packed, tile_b=8)
    out = jax.block_until_ready(out)

    ref = rflnet_reference(x, block_params, final_params)
    assert out.shape == (batch, 1)
    # bf16 MXU operands vs f32 reference -> small, bounded numeric gap.
    assert jnp.allclose(out, ref, atol=5e-3, rtol=0.0), (out, ref)

    print("KERNEL_OK")
</pallas_src>

<mosaic_0001>
module attributes {stable_mosaic.version = 11 : i64} {
  func.func @kernel(%arg0: i32, %arg1: memref<8x16xf32, #tpu.memory_space<vmem>>, %arg2: memref<16x32xbf16, #tpu.memory_space<vmem>>, %arg3: memref<2x32x64xbf16, #tpu.memory_space<vmem>>, %arg4: memref<7x64xf32, #tpu.memory_space<vmem>>, %arg5: memref<8x128xf32, #tpu.memory_space<vmem>>) attributes {dimension_semantics = [#tpu.dimension_semantics<parallel>], iteration_bounds = array<i64: 2>, scalar_prefetch = 0 : i64, scratch_operands = 0 : i64, tpu.core_type = #tpu.core_type<tc>, window_params = [{transform_indices = @transform_0, window_bounds = array<i64: 8, 16>}, {pipeline_mode = #tpu.pipeline_mode<synchronous>, transform_indices = @transform_1, window_bounds = array<i64: 16, 32>}, {pipeline_mode = #tpu.pipeline_mode<synchronous>, transform_indices = @transform_2, window_bounds = array<i64: 2, 32, 64>}, {pipeline_mode = #tpu.pipeline_mode<synchronous>, transform_indices = @transform_3, window_bounds = array<i64: 7, 64>}, {transform_indices = @transform_4, window_bounds = array<i64: 8, 128>}]} {
    %c0 = arith.constant 0 : index
    %c0_0 = arith.constant 0 : index
    %0 = vector.load %arg1[%c0, %c0_0] : memref<8x16xf32, #tpu.memory_space<vmem>>, vector<8x16xf32>
    %1 = arith.truncf %0 : vector<8x16xf32> to vector<8x16xbf16>
    %c0_1 = arith.constant 0 : index
    %c0_2 = arith.constant 0 : index
    %2 = vector.load %arg2[%c0_1, %c0_2] : memref<16x32xbf16, #tpu.memory_space<vmem>>, vector<16x32xbf16>
    %cst = arith.constant dense<0.000000e+00> : vector<8x32xf32>
    %3 = tpu.matmul %1, %2, %cst {dimension_numbers = #tpu.dot_dimension_numbers<[1], [0], [0], [1], [0, 0, 1, 1], [], []>} : vector<8x16xbf16>, vector<16x32xbf16>, vector<8x32xf32> -> vector<8x32xf32>
    %c0_3 = arith.constant 0 : index
    %c0_4 = arith.constant 0 : index
    %4 = vector.load %arg4[%c0_3, %c0_4] : memref<7x64xf32, #tpu.memory_space<vmem>>, vector<1x32xf32>
    %5 = vector.broadcast %4 : vector<1x32xf32> to vector<8x32xf32>
    %6 = arith.addf %3, %5 : vector<8x32xf32>
    %7 = math.tanh %6 : vector<8x32xf32>
    %8 = arith.truncf %7 : vector<8x32xf32> to vector<8x32xbf16>
    %c0_5 = arith.constant 0 : index
    %c0_6 = arith.constant 0 : index
    %c0_7 = arith.constant 0 : index
    %9 = vector.load %arg3[%c0_5, %c0_6, %c0_7] : memref<2x32x64xbf16, #tpu.memory_space<vmem>>, vector<1x32x64xbf16>
    %10 = vector.shape_cast %9 : vector<1x32x64xbf16> to vector<32x64xbf16>
    %cst_8 = arith.constant dense<0.000000e+00> : vector<8x64xf32>
    %11 = tpu.matmul %8, %10, %cst_8 {dimension_numbers = #tpu.dot_dimension_numbers<[1], [0], [0], [1], [0, 0, 1, 1], [], []>} : vector<8x32xbf16>, vector<32x64xbf16>, vector<8x64xf32> -> vector<8x64xf32>
    %c2 = arith.constant 2 : index
    %c0_9 = arith.constant 0 : index
    %12 = vector.load %arg4[%c2, %c0_9] : memref<7x64xf32, #tpu.memory_space<vmem>>, vector<1x64xf32>
    %13 = vector.broadcast %12 : vector<1x64xf32> to vector<8x64xf32>
    %14 = arith.addf %11, %13 : vector<8x64xf32>
    %15 = math.tanh %14 : vector<8x64xf32>
    %16 = vector.extract_strided_slice %15 {offsets = [0, 0], sizes = [8, 32], strides = [1, 1]} : vector<8x64xf32> to vector<8x32xf32>
    %17 = vector.extract_strided_slice %15 {offsets = [0, 32], sizes = [8, 32], strides = [1, 1]} : vector<8x64xf32> to vector<8x32xf32>
    %c4 = arith.constant 4 : index
    %c0_10 = arith.constant 0 : index
    %18 = vector.load %arg4[%c4, %c0_10] : memref<7x64xf32, #tpu.memory_space<vmem>>, vector<1x64xf32>
    %19 = vector.broadcast %18 : vector<1x64xf32> to vector<8x64xf32>
    %20 = arith.mulf %15, %19 : vector<8x64xf32>
    %cst_11 = arith.constant dense<0.000000e+00> : vector<8xf32>
    %21 = vector.multi_reduction <add>, %20, %cst_11 [1] : vector<8x64xf32> to vector<8xf32>
    %22 = vector.shape_cast %21 : vector<8xf32> to vector<8x1xf32>
    %c6 = arith.constant 6 : index
    %c0_12 = arith.constant 0 : index
    %23 = vector.load %arg4[%c6, %c0_12] : memref<7x64xf32, #tpu.memory_space<vmem>>, vector<1x1xf32>
    %24 = vector.broadcast %23 : vector<1x1xf32> to vector<8x1xf32>
    %25 = arith.addf %22, %24 : vector<8x1xf32>
    %26 = arith.negf %25 : vector<8x1xf32>
    %27 = math.exp %26 : vector<8x1xf32>
    %cst_13 = arith.constant 1.000000e+00 : f32
    %28 = vector.broadcast %cst_13 : f32 to vector<8x1xf32>
    %29 = arith.addf %28, %27 : vector<8x1xf32>
    %30 = arith.divf %28, %29 : vector<8x1xf32>
    %31 = arith.subf %16, %17 : vector<8x32xf32>
    %32 = vector.broadcast %30 : vector<8x1xf32> to vector<8x32xf32>
    %33 = arith.mulf %32, %31 : vector<8x32xf32>
    %34 = arith.addf %17, %33 : vector<8x32xf32>
    %35 = arith.truncf %34 : vector<8x32xf32> to vector<8x32xbf16>
    %c1 = arith.constant 1 : index
    %c0_14 = arith.constant 0 : index
    %c0_15 = arith.constant 0 : index
    %36 = vector.load %arg3[%c1, %c0_14, %c0_15] : memref<2x32x64xbf16, #tpu.memory_space<vmem>>, vector<1x32x64xbf16>
    %37 = vector.shape_cast %36 : vector<1x32x64xbf16> to vector<32x64xbf16>
    %cst_16 = arith.constant dense<0.000000e+00> : vector<8x64xf32>
    %38 = tpu.matmul %35, %37, %cst_16 {dimension_numbers = #tpu.dot_dimension_numbers<[1], [0], [0], [1], [0, 0, 1, 1], [], []>} : vector<8x32xbf16>, vector<32x64xbf16>, vector<8x64xf32> -> vector<8x64xf32>
    %c3 = arith.constant 3 : index
    %c0_17 = arith.constant 0 : index
    %39 = vector.load %arg4[%c3, %c0_17] : memref<7x64xf32, #tpu.memory_space<vmem>>, vector<1x64xf32>
    %40 = vector.broadcast %39 : vector<1x64xf32> to vector<8x64xf32>
    %41 = arith.addf %38, %40 : vector<8x64xf32>
    %42 = math.tanh %41 : vector<8x64xf32>
    %43 = vector.extract_strided_slice %42 {offsets = [0, 0], sizes = [8, 32], strides = [1, 1]} : vector<8x64xf32> to vector<8x32xf32>
    %44 = vector.extract_strided_slice %42 {offsets = [0, 32], sizes = [8, 32], strides = [1, 1]} : vector<8x64xf32> to vector<8x32xf32>
    %c5 = arith.constant 5 : index
    %c0_18 = arith.constant 0 : index
    %45 = vector.load %arg4[%c5, %c0_18] : memref<7x64xf32, #tpu.memory_space<vmem>>, vector<1x64xf32>
    %46 = vector.broadcast %45 : vector<1x64xf32> to vector<8x64xf32>
    %47 = arith.mulf %42, %46 : vector<8x64xf32>
    %cst_19 = arith.constant dense<0.000000e+00> : vector<8xf32>
    %48 = vector.multi_reduction <add>, %47, %cst_19 [1] : vector<8x64xf32> to vector<8xf32>
    %49 = vector.shape_cast %48 : vector<8xf32> to vector<8x1xf32>
    %c6_20 = arith.constant 6 : index
    %c1_21 = arith.constant 1 : index
    %50 = vector.load %arg4[%c6_20, %c1_21] : memref<7x64xf32, #tpu.memory_space<vmem>>, vector<1x1xf32>
    %51 = vector.broadcast %50 : vector<1x1xf32> to vector<8x1xf32>
    %52 = arith.addf %49, %51 : vector<8x1xf32>
    %53 = arith.negf %52 : vector<8x1xf32>
    %54 = math.exp %53 : vector<8x1xf32>
    %cst_22 = arith.constant 1.000000e+00 : f32
    %55 = vector.broadcast %cst_22 : f32 to vector<8x1xf32>
    %56 = arith.addf %55, %54 : vector<8x1xf32>
    %57 = arith.divf %55, %56 : vector<8x1xf32>
    %58 = arith.subf %43, %44 : vector<8x32xf32>
    %59 = vector.broadcast %57 : vector<8x1xf32> to vector<8x32xf32>
    %60 = arith.mulf %59, %58 : vector<8x32xf32>
    %61 = arith.addf %44, %60 : vector<8x32xf32>
    %c1_23 = arith.constant 1 : index
    %c0_24 = arith.constant 0 : index
    %62 = vector.load %arg4[%c1_23, %c0_24] : memref<7x64xf32, #tpu.memory_space<vmem>>, vector<1x32xf32>
    %63 = vector.broadcast %62 : vector<1x32xf32> to vector<8x32xf32>
    %64 = arith.mulf %61, %63 : vector<8x32xf32>
    %cst_25 = arith.constant dense<0.000000e+00> : vector<8xf32>
    %65 = vector.multi_reduction <add>, %64, %cst_25 [1] : vector<8x32xf32> to vector<8xf32>
    %66 = vector.shape_cast %65 : vector<8xf32> to vector<8x1xf32>
    %c6_26 = arith.constant 6 : index
    %c2_27 = arith.constant 2 : index
    %67 = vector.load %arg4[%c6_26, %c2_27] : memref<7x64xf32, #tpu.memory_space<vmem>>, vector<1x1xf32>
    %68 = vector.broadcast %67 : vector<1x1xf32> to vector<8x1xf32>
    %69 = arith.addf %66, %68 : vector<8x1xf32>
    %70 = arith.negf %69 : vector<8x1xf32>
    %71 = math.exp %70 : vector<8x1xf32>
    %cst_28 = arith.constant 1.000000e+00 : f32
    %72 = vector.broadcast %cst_28 : f32 to vector<8x1xf32>
    %73 = arith.addf %72, %71 : vector<8x1xf32>
    %74 = arith.divf %72, %73 : vector<8x1xf32>
    %75 = vector.shape_cast %74 : vector<8x1xf32> to vector<8x1xf32>
    %76 = vector.broadcast %75 : vector<8x1xf32> to vector<8x128xf32>
    %c0_29 = arith.constant 0 : index
    %c0_30 = arith.constant 0 : index
    %77 = vector.load %arg5[%c0_29, %c0_30] : memref<8x128xf32, #tpu.memory_space<vmem>>, vector<8x128xf32>
    tpu.vector_store %arg5[%c0_29, %c0_30], %76 {strides = array<i32>} : memref<8x128xf32, #tpu.memory_space<vmem>>, vector<8x128xf32>,
    return
  }
  func.func @transform_0(%arg0: i32) -> (i32, i32) {
    %c0_i32 = arith.constant 0 : i32
    %c0_i32_0 = arith.constant 0 : i32
    return %arg0, %c0_i32 : i32, i32
  }
  func.func @transform_1(%arg0: i32) -> (i32, i32) {
    %c0_i32 = arith.constant 0 : i32
    %c0_i32_0 = arith.constant 0 : i32
    %c0_i32_1 = arith.constant 0 : i32
    return %c0_i32, %c0_i32_0 : i32, i32
  }
  func.func @transform_2(%arg0: i32) -> (i32, i32, i32) {
    %c0_i32 = arith.constant 0 : i32
    %c0_i32_0 = arith.constant 0 : i32
    %c0_i32_1 = arith.constant 0 : i32
    %c0_i32_2 = arith.constant 0 : i32
    return %c0_i32, %c0_i32_0, %c0_i32_1 : i32, i32, i32
  }
  func.func @transform_3(%arg0: i32) -> (i32, i32) {
    %c0_i32 = arith.constant 0 : i32
    %c0_i32_0 = arith.constant 0 : i32
    %c0_i32_1 = arith.constant 0 : i32
    return %c0_i32, %c0_i32_0 : i32, i32
  }
  func.func @transform_4(%arg0: i32) -> (i32, i32) {
    %c0_i32 = arith.constant 0 : i32
    %c0_i32_0 = arith.constant 0 : i32
    return %arg0, %c0_i32 : i32, i32
  }
}

</mosaic_0001>

<bundles_post_ra>
// kernel: tpu_custom_call.1
= control target key start
LH: loop header
LB: loop body
LE: loop exit
PB: predicated region body
PF: predicated region fallthrough
CT: control target
= control target key end

     0   :  { %9 = vsyncpa [#allocation3], 0  ;;  %s1276_s0 = inlined_call_operand.hbm [shape: f32[16,16], index: 0, kind: input, shape index: {}]   ;;  %s1277_s1 = inlined_call_operand.hbm [shape: bf16[16,32], index: 1, kind: input, shape index: {}]   ;;  %s1278_s2 = inlined_call_operand.hbm [shape: bf16[2,32,64], index: 2, kind: input, shape index: {}]   ;;  %s1279_s3 = inlined_call_operand.vmem [shape: f32[7,64], index: 3, kind: input, shape index: {}]   ;;  %s1280_s4 = inlined_call_operand.hbm [shape: f32[16,128], index: 4, kind: output, shape index: {}]  }
   0x1   :  { %11 = vsyncpa [#allocation3 + $0x1], 0 }
   0x2   :  { %12 = vsyncpa [#allocation6], 0 }
   0x3   :  { %13 = vsyncpa [#allocation4], 0 }
   0x4   :  { %15 = vsyncpa [#allocation4 + $0x1], 0  ;;  %s1005_s15 = smov 0   ;;  %s1007_s16 = smov 0  }
   0x5   :  { %s1009_s17 = smov 0   ;;  %s1011_s18 = smov 0  }
   0x6 LB: > { %s1026_s19 = sadd.s32 4294967295, %s965_s18   ;;  %s643_s20 = sadd.s32 4294967294, %s965_s18   ;;  %s965_s18 = sphi %s1011_s18, %s1300_s18   ;;  %s961_s17 = sphi %s1009_s17, %s1299_s17   ;;  %s957_s16 = sphi %s1007_s16, %s1298_s16   ;;  %s953_s15 = sphi %s1005_s15, %s1297_s15  }
   0x7   : > { %p41_p0 = scmp.ne.s32.totalorder %s957_s16, %s953_s15  ;;  %p1281_p1 = scmp.eq.s32.totalorder %s1026_s19, 0 }
   0x8   : > { %p134_p3 = scmp.eq.s32.totalorder %s643_s20, 1  ;;  %p644_p5 = scmp.ge.s32.totalorder %s965_s18, 1 }
   0x9   : > { %p1035_p4 = por %p1281_p1, %p41_p0  ;;  %p141_p7 = scmp.lt.s32.totalorder %s965_s18, 3 }
   0xa   : > { %p1040_p6 = por %p134_p3, %p41_p0  ;;  %s967_s24 = smov [#allocation5]  }
   0xb   : > { %s1284_s21 = scalar_select %p1035_p4, 1, 0 }
   0xc   : > { %s1285_s22 = scalar_select %p1040_p6, 1, 0 }
   0xd   : > { %p1045_p8 = pnand %p644_p5, %p141_p7  ;;  %s153_s25 = sshll.u32 %s967_s24, 4  ;;  %s1049_s25 = int_to_ptr.vmem [resolvable:$true] %s153_s25 }
   0xe   : > { %s968_s27 = smov [#allocation7]   ;;  %s809_s5 = scalar_lea.hbm %s1277_s1, 128 }
   0xf   : > { %p719_p9 = pneg %p1045_p8  ;;  %s166_s28 = sshll.u32 %s968_s27, 4  ;;  %s1060_s28 = int_to_ptr.vmem [resolvable:$true] %s166_s28 }
  0x10   : > { %p810_p12 = scmp.ne.s32.totalorder %s1277_s1, %s809_s5  ;;  %p816_p5 = scmp.lt.u32.totalorder %s809_s5, %s1277_s1 }
  0x11   : > { %p1056_p11 = pnand %p719_p9, %p1281_p1 }
  0x13   : > { %p811_p13 = pneg %p1056_p11 }
  0x15   : > { %p812_p0 = pnand %p811_p13, %p810_p12 }
  0x17   : > { %p813_p3 = pneg %p812_p0 }
  0x19   : > { %p818_p7 = pnand %p816_p5, %p813_p3 }
  0x1b   : > { %821 = shalt.err (!%p818_p7)
}
  0x1c   : > { %s822_s10 = scalar_lea.vmem %s1049_s25, 128  ;;  %p830_p2 = scmp.lt.s32.totalorder %s1049_s25, %s1049_s25 }
  0x1d   : > { %p823_p9 = scmp.ne.s32.totalorder %s1049_s25, %s822_s10  ;;  %p831_p12 = scmp.lt.s32.totalorder %s822_s10, %s822_s10 }
  0x1f   : > { %p825_p10 = pnand %p823_p9, %p811_p13  ;;  %p832_p0 = por %p831_p12, %p830_p2 }
  0x21   : > { %p826_p1 = pneg %p825_p10 }
  0x23   : > { %p833_p6 = pnand %p832_p0, %p826_p1 }
  0x25   : > { %836 = shalt.err (!%p833_p6)
}
  0x26   : > { %s969_s11 = smov 64   ;;  %s970_s12 = smov 4  }
  0x27   : > { %722 = dma.hbm_to_vmem [thread:$0]  (!%p1056_p11), %s1277_s1, 128, %s1049_s25, [#allocation6], %s969_s11, %s969_s11, %s970_s12  }
  0x28   : > { %s837_s27 = scalar_lea.hbm %s1278_s2, 512 }
  0x29   : > { %p838_p2 = scmp.ne.s32.totalorder %s1278_s2, %s837_s27  ;;  %p844_p10 = scmp.lt.u32.totalorder %s837_s27, %s1278_s2 }
  0x2b   : > { %p840_p1 = pnand %p838_p2, %p811_p13 }
  0x2d   : > { %p841_p6 = pneg %p840_p1 }
  0x2f   : > { %p846_p3 = pnand %p844_p10, %p841_p6 }
  0x31   : > { %849 = shalt.err (!%p846_p3)
}
  0x32   : > { %s850_s25 = scalar_lea.vmem %s1060_s28, 512  ;;  %p858_p12 = scmp.lt.s32.totalorder %s1060_s28, %s1060_s28 }
  0x33   : > { %p851_p5 = scmp.ne.s32.totalorder %s1060_s28, %s850_s25  ;;  %p859_p0 = scmp.lt.s32.totalorder %s850_s25, %s850_s25 }
  0x35   : > { %p853_p7 = pnand %p851_p5, %p811_p13  ;;  %p860_p2 = por %p859_p0, %p858_p12 }
  0x37   : > { %p854_p9 = pneg %p853_p7 }
  0x39   : > { %p861_p1 = pnand %p860_p2, %p854_p9 }
  0x3b   : > { %864 = shalt.err (!%p861_p1)
}
  0x3c   : > { %725 = dma.hbm_to_vmem [thread:$0]  (!%p1056_p11), %s1278_s2, 512, %s1060_s28, [#allocation6], %s969_s11, %s969_s11, %s970_s12  }
  0x3d   : > { %s1115_s9 = sadd.s32 1, %s965_s18   ;;  %s28_s26 = sadd.s32 1, %s961_s17 }
  0x3e   : > { %s25_s10 = ssub.s32 %s965_s18, %s1115_s9  ;;  %p35_p13 = scmp.ne.s32.totalorder %s961_s17, %s957_s16 }
  0x3f   : > { %p26_p6 = scmp.eq.s32.totalorder %s25_s10, 0  ;;  %p36_p10 = scmp.eq.s32.totalorder %s965_s18, 0 }
  0x40   : > { %p1288_p3 = scmp.eq.s32.totalorder %s1026_s19, 1  ;;  %p736_p7 = scmp.lt.s32.totalorder %s965_s18, 2 }
  0x41   : > { %s1131_s14 = scalar_select %p26_p6, %s961_s17, %s28_s26  }
  0x42   : > { %p1125_p5 = por %p1288_p3, %p35_p13  ;;  %p37_p9 = por %p36_p10, %p35_p13 }
  0x43   : > { %s183_s20 = sand.u32 1, %s961_s17   ;;  %s649_s28 = sshll.u32 %s965_s18, 7 }
  0x44   : > { %s1289_s13 = scalar_select %p1125_p5, 1, 0 }
  0x45   : > { %s648_s24 = sshll.u32 %s183_s20, 3  ;;  %s1138_s27 = scalar_lea.hbm %s1276_s0, %s649_s28 }
  0x46   : > { %s187_s29 = scalar_lea.vmem [#allocation2], %s648_s24  ;;  %p1142_p11 = pnand %p736_p7, %p37_p9 }
  0x47   : > { %s194_s30 = sshll.u32 %s187_s29, 4  ;;  %s184_s6 = scalar_lea.sflag [#allocation3], %s183_s20  ;;  %s1140_s30 = int_to_ptr.vmem [resolvable:$true] %s194_s30 }
  0x48   : > { %s865_s25 = scalar_lea.hbm %s1138_s27, 128  ;;  %p867_p0 = pneg %p1142_p11 }
  0x49   : > { %p866_p12 = scmp.ne.s32.totalorder %s1138_s27, %s865_s25  ;;  %s870_s26 = scalar_lea.hbm %s1276_s0, 256 }
  0x4a   : > { %p871_p13 = scmp.lt.u32.totalorder %s1138_s27, %s1276_s0  ;;  %p872_p6 = scmp.lt.u32.totalorder %s870_s26, %s865_s25 }
  0x4b   : > { %p868_p2 = pnand %p867_p0, %p866_p12  ;;  %p874_p3 = scmp.lt.u32.totalorder %s865_s25, %s1138_s27 }
  0x4c   : > { %p873_p10 = por %p872_p6, %p871_p13 }
  0x4d   : > { %p869_p1 = pneg %p868_p2 }
  0x4e   : > { %p875_p7 = por %p874_p3, %p873_p10 }
  0x50   : > { %p876_p9 = pnand %p875_p7, %p869_p1 }
  0x52   : > { %879 = shalt.err (!%p876_p9)
}
  0x53   : > { %s880_s20 = scalar_lea.vmem %s1140_s30, 128  ;;  %s971_s28 = smov [#allocation2]  }
  0x54   : > { %p881_p12 = scmp.ne.s32.totalorder %s1140_s30, %s880_s20  ;;  %s885_s11 = sshll.u32 %s971_s28, 4  ;;  %s886_s11 = int_to_ptr.vmem [resolvable:$false] %s885_s11 }
  0x55   : > { %s887_s12 = scalar_lea.vmem %s886_s11, 256  ;;  %p888_p4 = scmp.lt.s32.totalorder %s1140_s30, %s886_s11 }
  0x56   : > { %p883_p2 = pnand %p881_p12, %p867_p0  ;;  %p889_p13 = scmp.lt.s32.totalorder %s887_s12, %s880_s20 }
  0x58   : > { %p884_p5 = pneg %p883_p2  ;;  %p890_p6 = por %p889_p13, %p888_p4 }
  0x5a   : > { %p891_p10 = pnand %p890_p6, %p884_p5 }
  0x5c   : > { %894 = shalt.err (!%p891_p10)
}
  0x5d   : > { %729 = dma.hbm_to_vmem [thread:$0]  (!%p1142_p11), %s1138_s27, 128, %s1140_s30, %s184_s6  }
  0x5e   : > { %203 = sbr.rel (%p1045_p8) target bundleno = 2177 (0x881), region = 36  ;;  %s1174_s29 = sand.u32 (!%p1045_p8), 1, %s957_s16  }
  0x5f   : > { %s651_s25 = sshll.u32 (!%p1045_p8), %s1174_s29, 3  ;;  %s206_s7 = scalar_lea.sflag (!%p1045_p8), [#allocation3], %s1174_s29 }
  0x60   : > { %s209_s8 = scalar_lea.vmem (!%p1045_p8), [#allocation2], %s651_s25  ;;  %p1291_p4 = scmp.ne.s32.totalorder (!%p1045_p8), %s1284_s21, 0 }
  0x65   : > { %940 = dma.done.wait (%p1291_p4), %s206_s7, 128  }
  0x66   : > { %942 = vsyncadd (%p1291_p4), %s206_s7, 4294967168  ;;  %p1292_p5 = scmp.eq.s32.totalorder %s1026_s19, 0 }
  0x68   : > { %944 = dma.done.wait (%p1292_p5), [#allocation6], 640   ;;  %p1293_p8 = pmov %p1292_p5 }
  0x69   : > { %v972_v0 = vmov 0.0   ;;  %vm973_vm0 = vmmov 0   ;;  %v786_v1 = vld [vmem:[#allocation5] sm:$0xff]   ;;  %v243_v2 = vld [vmem:[%s209_s8] sm:$0xff]  ;;  %vm258_vm1 = vcmask 130048   ;;  %v787_v4 = vld [vmem:[#allocation7] sm:$0xff]  }
  0x6a   : > { %946 = vsyncadd (%p1293_p8), [#allocation6], 4294966656  ;;  %685 = vmatprep.subr.bf16.mxu0 %v972_v0  ;;  %687 = vmatprep.mubr.msk.bf16.mxu0 %vm973_vm0, %v972_v0  ;;  %v244_v3 = vpack.c.bf16 %v243_v2, %v243_v2  ;;  %v788_v5 = vld [vmem:[#allocation7 + $0x8] sm:$0xff]   ;;  %vm325_vm2 = vcmask 261120   ;;  %vm376_vm3 = vcmask 523264   ;;  %s974_s26 = smov 96  }
  0x6b   : > { %691 = vmatprep.subr.bf16.mxu1 %v972_v0  ;;  %695 = vmatprep.mubr.msk.bf16.mxu1 %vm973_vm0, %v972_v0  ;;  %v655_v6 = vld [vmem:[%s1279_s3] ss:$0 sm:$0xff]  ;;  %v658_v14 = vld [vmem:[%s1279_s3 + $0x2] ss:$0 sm:$0xff]  ;;  %v662_v20 = vld [vmem:[%s1279_s3 + $0x4] ss:$0 sm:$0xff] }
  0x6c   : > { %686 = vmatpush3.bf16.msra.mxu0 %v786_v1  ;;  %692 = vmatpush3.bf16.msra.mxu1 %v787_v4  ;;  %v975_v24 = vmov 0   ;;  %v1203_v25 = vld [vmem:[%s1279_s3 + $0x6] ss:$0 sm:$0xff]  ;;  %v789_v32 = vld [vmem:[#allocation7 + $0x10] sm:$0xff]   ;;  %v790_v34 = vld [vmem:[#allocation7 + $0x18] sm:$0xff]   ;;  %s976_s20 = smov 32  }
  0x6d   : > { %699 = vmatprep.subr.bf16.mxu0 %v972_v0  ;;  %693 = vmatprep.subr.bf16.mxu1 %v972_v0  ;;  %v665_v42 = vld [vmem:[%s1279_s3 + $0x3] ss:$0 sm:$0xff]  ;;  %v669_v48 = vld [vmem:[%s1279_s3 + $0x5] ss:$0 sm:$0xff]  ;;  %v977_v52 = vmov 1   ;;  %s241_s23 = scalar_lea.vmem [#allocation8], %s651_s25 }
  0x6e   : > { %783 = vset.pattern.permute.xlu0 %v975_v24  ;;  %v671_v63 = vld [vmem:[%s1279_s3 + $0x1] ss:$0 sm:$0xff]  ;;  %s554_s27 = sshll.u32 %s241_s23, 4  ;;  %s674_s30 = sshll.u32 %s1026_s19, 7  ;;  %s1229_s27 = int_to_ptr.vmem [resolvable:$true] %s554_s27 }
  0x6f   : > { %688 = vmatmul.mubr.msk.bf16.vlgmr.msra.gmra.mrb[0].mxu0 %vm258_vm1, %v244_v3  ;;  %s541_s10 = scalar_lea.sflag [#allocation4], %s1174_s29  ;;  %s895_s24 = scalar_lea.vmem %s1229_s27, 128 }
  0x70   : > { %703 = vmatprep.mubr.msk.bf16.mxu0 %vm973_vm0, %v972_v0  ;;  %694 = vmatpush3.bf16.msra.mxu1 %v788_v5  ;;  %p896_p11 = scmp.ne.s32.totalorder %s1229_s27, %s895_s24  ;;  %p1294_p0 = scmp.ne.s32.totalorder %s1289_s13, 0 }
  0x71   : > { %700 = vmatpush3.bf16.msra.mxu0 %v789_v32  ;;  %s979_s25 = smov [#allocation8]  }
  0x72   : > { %701 = vmatprep.subr.bf16.mxu0 %v972_v0  ;;  %p897_p1 = pnand %p896_p11, %p1294_p0  ;;  %s899_s19 = sshll.u32 %s979_s25, 4  ;;  %s900_s19 = int_to_ptr.vmem [resolvable:$false] %s899_s19 }
  0x73   : > { %p902_p7 = scmp.lt.s32.totalorder %s1229_s27, %s900_s19 }
  0x74   : > { %p898_p3 = pneg %p897_p1 }
  0x75   : > { %702 = vmatpush3.bf16.msra.mxu0 %v790_v34 }
 0x142   : > { %v296_v7 = vpop.f32.mrb[0].mxu0 }
 0x143   : > { %v297_v8 = vadd.f32 %v655_v6, %v296_v7  ;;  %v689_v9 = vpop.f32.mrb[1].mxu0  ;;  %v978_v6 = vmov 2  }
 0x144   : > { %v299_v10 = vpop.f32.mrb[2].mxu0 }
 0x145   : > { %791 = vtanh.f32 %v297_v8  ;;  %v690_v11 = vpop.f32.mrb[3].mxu0 }
 0x14f   : > { %v792_v12 = vpop.eup %791 }
 0x150   : > { %v303_v13 = vpack.c.bf16 %v792_v12, %v792_v12 }
 0x152   : > { %696 = vmatmul.mubr.msk.bf16.vlgmr.msra.gmra.mrb[0].mxu1 %vm325_vm2, %v303_v13 }
 0x225   : > { %v363_v15 = vpop.f32.mrb[0].mxu1 }
 0x226   : > { %v364_v16 = vadd.f32 %v658_v14, %v363_v15  ;;  %v697_v17 = vpop.f32.mrb[1].mxu1 }
 0x227   : > { %v366_v18 = vpop.f32.mrb[2].mxu1 }
 0x228   : > { %793 = vtanh.f32 %v364_v16  ;;  %v698_v19 = vpop.f32.mrb[3].mxu1 }
 0x232   : > { %v794_v21 = vpop.eup %793 }
 0x233   : > { %393 = vrot.lane.b32.xlu1 %v794_v21, %s974_s26  ;;  %v375_v22 = vmul.f32 %v794_v21, %v662_v20 }
 0x235   : > { %v377_v23 = vsel %vm376_vm3, %v375_v22, 0.0 }
 0x236   : > { %378 = vadd.xlane.f32.xlu0 %v377_v23 }
 0x2a5   : > { %v394_v33 = vpop.permute.xlu1 %393 }
 0x2a6   : > { %v396_v35 = vsub.f32 %v794_v21, %v394_v33 }
 0x2c3   : > { %v379_v26 = vpop.xlane.xlu0 %378 }
 0x2c4   : > { %v385_v27 = vadd.f32 %v1203_v25, %v379_v26 }
 0x2c6   : > { %v664_v28 = vmul.f32 -1.442695, %v385_v27 }
 0x2c8   : > { %795 = vpow2.f32 %v664_v28 }
 0x2d2   : > { %v796_v29 = vpop.eup %795 }
 0x2d3   : > { %v389_v30 = vadd.f32 1.0, %v796_v29 }
 0x2d5   : > { %797 = vrcp.f32 %v389_v30 }
 0x2df   : > { %v798_v31 = vpop.eup %797 }
 0x2e0   : > { %399 = vperm.xlu0 %783, %v798_v31  }
 0x2e4   : > { %784 = vset.pattern.permute.xlu0 %v977_v52 }
 0x35f   : > { %v400_v36 = vpop.permute.xlu0 %399 }
 0x360   : > { %v402_v37 = vmul.f32 %v400_v36, %v396_v35 }
 0x362   : > { %404 = vrot.lane.b32.xlu1 %v402_v37, %s976_s20 }
 0x3d4   : > { %v405_v38 = vpop.permute.xlu1 %404 }
 0x3d5   : > { %v407_v39 = vadd.f32 %v794_v21, %v405_v38 }
 0x3d7   : > { %v408_v40 = vpack.c.bf16 %v407_v39, %v407_v39 }
 0x3d9   : > { %420 = vrot.lane.b32.xlu1 %v408_v40, %s974_s26 }
 0x44b   : > { %v421_v41 = vpop.permute.xlu1 %420 }
 0x44c   : > { %704 = vmatmul.mubr.msk.bf16.vlgmr.msra.gmra.mrb[4].mxu0 %vm325_vm2, %v421_v41 }
 0x51f   : > { %v471_v43 = vpop.f32.mrb[4].mxu0 }
 0x520   : > { %v472_v44 = vadd.f32 %v665_v42, %v471_v43  ;;  %v705_v45 = vpop.f32.mrb[5].mxu0 }
 0x521   : > { %v474_v46 = vpop.f32.mrb[6].mxu0 }
 0x522   : > { %799 = vtanh.f32 %v472_v44  ;;  %v706_v47 = vpop.f32.mrb[7].mxu0 }
 0x52c   : > { %v800_v49 = vpop.eup %799 }
 0x52d   : > { %v483_v50 = vmul.f32 %v800_v49, %v669_v48 }
 0x52f   : > { %v484_v51 = vsel %vm376_vm3, %v483_v50, 0.0 }
 0x530   : > { %485 = vadd.xlane.f32.xlu1 %v484_v51 }
 0x541   : > { %495 = vrot.lane.b32.xlu1 %v800_v49, %s974_s26 }
 0x5bd   : > { %v486_v53 = vpop.xlane.xlu1 %485 }
 0x5be   : > { %v487_v54 = vadd.f32 %v1203_v25, %v486_v53 }
 0x5c0   : > { %v670_v55 = vmul.f32 -1.442695, %v487_v54 }
 0x5c1   : > { %v496_v59 = vpop.permute.xlu1 %495 }
 0x5c2   : > { %801 = vpow2.f32 %v670_v55  ;;  %v498_v60 = vsub.f32 %v800_v49, %v496_v59 }
 0x5cc   : > { %v802_v56 = vpop.eup %801 }
 0x5cd   : > { %v491_v57 = vadd.f32 1.0, %v802_v56 }
 0x5cf   : > { %803 = vrcp.f32 %v491_v57 }
 0x5d9   : > { %v804_v58 = vpop.eup %803 }
 0x5da   : > { %501 = vperm.xlu0 %784, %v804_v58  }
 0x5de   : > { %785 = vset.pattern.permute.xlu0 %v978_v6 }
 0x659   : > { %v502_v61 = vpop.permute.xlu0 %501 }
 0x65a   : > { %v504_v62 = vmul.f32 %v502_v61, %v498_v60 }
 0x65c   : > { %506 = vrot.lane.b32.xlu0 %v504_v62, %s976_s20 }
 0x660   : > { %516 = vrot.lane.b32.xlu0 %v671_v63, %s976_s20  ;;  %s901_s20 = scalar_lea.vmem %s900_s19, 256 }
 0x661   : > { %p903_p9 = scmp.lt.s32.totalorder %s901_s20, %s895_s24 }
 0x663   : > { %p904_p12 = por %p903_p9, %p902_p7 }
 0x665   : > { %p905_p2 = pnand %p904_p12, %p898_p3 }
 0x6ce   : > { %v507_v0 = vpop.permute.xlu0 %506 }
 0x6cf   : > { %v509_v1 = vadd.f32 %v800_v49, %v507_v0 }
 0x6d2   : > { %v517_v2 = vpop.permute.xlu0 %516 }
 0x6d3   : > { %v519_v3 = vmul.f32 %v517_v2, %v509_v1 }
 0x6d5   : > { %521 = vrot.lane.b32.xlu0 %v519_v3, %s974_s26  ;;  %s1234_s26 = scalar_lea.hbm %s1280_s4, %s674_s30 }
 0x747   : > { %v522_v4 = vpop.permute.xlu0 %521 }
 0x748   : > { %v524_v5 = vsel %vm325_vm2, %v522_v4, 0.0 }
 0x749   : > { %525 = vadd.xlane.f32.xlu1 %v524_v5 }
 0x7d6   : > { %v526_v7 = vpop.xlane.xlu1 %525 }
 0x7d7   : > { %v527_v8 = vadd.f32 %v1203_v25, %v526_v7 }
 0x7d9   : > { %v672_v9 = vmul.f32 -1.442695, %v527_v8 }
 0x7db   : > { %805 = vpow2.f32 %v672_v9 }
 0x7e5   : > { %v806_v10 = vpop.eup %805 }
 0x7e6   : > { %v531_v11 = vadd.f32 1.0, %v806_v10 }
 0x7e8   : > { %807 = vrcp.f32 %v531_v11 }
 0x7f2   : > { %v808_v12 = vpop.eup %807 }
 0x7f3   : > { %536 = vperm.xlu0 %785, %v808_v12  }
 0x872   : > { %v537_v13 = vpop.permute.xlu0 %536 }
 0x873   : > { %539 = vst [vmem:[%s241_s23] sm:$0xff] %v537_v13 }
 0x874   : > { %908 = shalt.err (!%p905_p2)
}
 0x875   : > { %s909_s29 = scalar_lea.hbm %s1234_s26, 128  ;;  %s913_s12 = scalar_lea.hbm %s1280_s4, 256 }
 0x876   : > { %p910_p13 = scmp.ne.s32.totalorder %s1234_s26, %s909_s29  ;;  %p914_p4 = scmp.lt.u32.totalorder %s1234_s26, %s1280_s4 }
 0x877   : > { %p915_p5 = scmp.lt.u32.totalorder %s913_s12, %s909_s29  ;;  %p917_p11 = scmp.lt.u32.totalorder %s909_s29, %s1234_s26 }
 0x878   : > { %p911_p6 = pnand %p910_p13, %p1294_p0 }
 0x879   : > { %p916_p8 = por %p915_p5, %p914_p4 }
 0x87a   : > { %p912_p10 = pneg %p911_p6 }
 0x87b   : > { %p918_p1 = por %p917_p11, %p916_p8 }
 0x87d   : > { %p919_p3 = pnand %p918_p1, %p912_p10 }
 0x87f   : > { %922 = shalt.err (!%p919_p3)
}
 0x880   : > { %717 = dma.vmem_to_hbm [thread:$0]  (%p1294_p0), %s1229_s27, 128, %s1234_s26, %s541_s10  }
 0x881 PF: > { %s566_s21 = sand.u32 1, %s953_s15   ;;  %p1295_p7 = scmp.ne.s32.totalorder %s1285_s22, 0 }
 0x882   : > { %p1296_p9 = scmp.ge.s32.totalorder %s965_s18, 2  ;;  %s567_s23 = scalar_lea.sflag [#allocation4], %s566_s21 }
 0x884   : > { %p731_p12 = pnand %p1296_p9, %p1295_p7 }
 0x886   : > { %948 = dma.done.wait (!%p731_p12), %s567_s23, 128  }
 0x887   : > { %950 = vsyncadd (!%p731_p12), %s567_s23, 4294967168  ;;  %p18_p2 = scmp.ge.s32.totalorder %s1115_s9, 4   ;;  %s1297_s15 = smov %s957_s16 }
 0x888   : > { %s1298_s16 = smov %s961_s17  ;;  %s1299_s17 = smov %s1131_s14 }
 0x889   : > { %s1300_s18 = smov %s1115_s9  ;;  %20 = sbr.rel (!%p18_p2) target bundleno = 6 (0x6), region = 90 }
 0x890   :  { %572 = vsyncpa [#allocation3], 1 }
 0x891   :  { %574 = vsyncpa [#allocation3 + $0x1], 1 }
 0x892   :  { %575 = vsyncpa [#allocation6], 1 }
 0x893   :  { %576 = vsyncpa [#allocation4], 1 }
 0x894   :  { %578 = vsyncpa [#allocation4 + $0x1], 1 }

</bundles_post_ra>
